<compile_context>
chip_gen: v7x
topology: tpu7x:2x2x1
jax: 0.10.0
libtpu: 0.0.40
codegen_flags: <defaults>
</compile_context>

<pallas_src>
import functools

import numpy as np
import jax
import jax.numpy as jnp
from jax.experimental import pallas as pl
from jax.experimental.pallas import tpu as pltpu

FPAD = 128      # lane-dense feature padding (last dim -> full 128 lanes)
SUBLANE = 8     # f32 sublane granularity


def _round_up(n, m):
    return ((n + m - 1) // m) * m


# ----------------------------------------------------------------------------
# Fused kernel: one grid step == one tree level (children processed first).
# ----------------------------------------------------------------------------
def _fused_tree_kernel(NP,
                       tok_ref, own_ref, par_ref,          # SMEM scalar-prefetch
                       emb_ref, w_ref, b_ref, floor_ref,   # VMEM, grid-resident
                       out_ref,                            # VMEM output
                       acc_ref, child_ref, xbuf_ref):      # VMEM scratch
    l = pl.program_id(0)

    @pl.when(l == 0)
    def _init():
        acc_ref[...] = floor_ref[...]                 # running-max seed (0 / -inf)
        child_ref[...] = jnp.zeros_like(child_ref)    # per-node child-sum slots

    # ---- in-kernel embedding gather for this level's NP (padded) nodes ----
    for i in range(NP):
        t = tok_ref[l, i]
        xbuf_ref[pl.ds(i, 1), :] = emb_ref[pl.ds(t, 1), :]

    # ---- one MXU matmul for the whole level: y = emb @ W_c^T + b_c ----
    y = jnp.dot(xbuf_ref[...], w_ref[...], preferred_element_type=jnp.float32)
    y = y + b_ref[...]

    # ---- add child contributions accumulated by earlier (deeper) levels ----
    base = pl.multiple_of(l * NP, NP)
    h = y + child_ref[pl.ds(base, NP), :]

    # ---- scatter: sum into the parent's slot, max into the batch row ----
    for i in range(NP):
        hi = h[i:i + 1, :]
        p = par_ref[l, i]                              # parent node slot (or trash)
        child_ref[pl.ds(p, 1), :] = child_ref[pl.ds(p, 1), :] + hi
        ob = own_ref[l, i]                             # owning batch row (or trash)
        acc_ref[pl.ds(ob, 1), :] = jnp.maximum(acc_ref[pl.ds(ob, 1), :], hi)

    @pl.when(l == pl.num_programs(0) - 1)
    def _finish():
        out_ref[...] = acc_ref[...]


@functools.partial(jax.jit,
                   static_argnames=("L", "NP", "BS_PAD", "bs", "encode_dim"))
def _tree_encode(tokens, owners, parents, emb_p, w_p, b_p, floor,
                 *, L, NP, BS_PAD, bs, encode_dim):
    kernel = functools.partial(_fused_tree_kernel, NP)
    grid_spec = pltpu.PrefetchScalarGridSpec(
        num_scalar_prefetch=3,                        # tokens / owners / parents
        grid=(L,),
        in_specs=[
            pl.BlockSpec(emb_p.shape, lambda l, *_: (0, 0)),   # VMEM-resident
            pl.BlockSpec(w_p.shape, lambda l, *_: (0, 0)),
            pl.BlockSpec(b_p.shape, lambda l, *_: (0, 0)),
            pl.BlockSpec(floor.shape, lambda l, *_: (0, 0)),
        ],
        out_specs=pl.BlockSpec((BS_PAD, FPAD), lambda l, *_: (0, 0)),
        scratch_shapes=[
            pltpu.VMEM((BS_PAD, FPAD), jnp.float32),           # running max
            pltpu.VMEM(((L + 1) * NP, FPAD), jnp.float32),     # child sums / node
            pltpu.VMEM((NP, FPAD), jnp.float32),               # gathered embeddings
        ],
    )
    out = pl.pallas_call(
        kernel,
        out_shape=jax.ShapeDtypeStruct((BS_PAD, FPAD), jnp.float32),
        grid_spec=grid_spec,
        compiler_params=pltpu.CompilerParams(
            dimension_semantics=("arbitrary",),   # levels are sequentially dependent
        ),
    )(tokens, owners, parents, emb_p, w_p, b_p, floor)
    return out[:bs, :encode_dim]


# ----------------------------------------------------------------------------
# BatchTreeEncoder (forward only)
# ----------------------------------------------------------------------------
class BatchTreeEncoder:
    def __init__(self, vocab_size, embedding_dim, encode_dim, batch_size, key):
        assert embedding_dim == encode_dim, (
            "forward semantics (index_copy of embeddings into an encode_dim "
            "buffer) require embedding_dim == encode_dim"
        )
        assert encode_dim <= FPAD
        self.vocab_size = vocab_size
        self.embedding_dim = embedding_dim
        self.encode_dim = encode_dim
        self.batch_size = batch_size
        self.stop = -1
        self.zero_token = vocab_size   # extra all-zero embedding row (stop rows)

        k0, k1, k2, k3, k4 = jax.random.split(key, 5)
        # nn.Embedding default init: N(0, 1)
        self.embedding = jax.random.normal(
            k0, (vocab_size, embedding_dim), jnp.float32)
        # nn.Linear default init: U(-1/sqrt(in), 1/sqrt(in))
        lim_c = 1.0 / np.sqrt(embedding_dim)
        self.W_c_T = jax.random.uniform(
            k1, (embedding_dim, encode_dim), jnp.float32, -lim_c, lim_c)
        self.b_c = jax.random.uniform(k2, (encode_dim,), jnp.float32, -lim_c, lim_c)
        # W_l / W_r exist in the PyTorch module but are unused in forward().
        lim_e = 1.0 / np.sqrt(encode_dim)
        self.W_l_T = jax.random.uniform(
            k3, (encode_dim, encode_dim), jnp.float32, -lim_e, lim_e)
        self.W_r_T = jax.random.uniform(
            k4, (encode_dim, encode_dim), jnp.float32, -lim_e, lim_e)

        # Lane-dense (128-padded) parameters, resident in VMEM during the kernel.
        emb_p = np.zeros((_round_up(vocab_size + 1, SUBLANE), FPAD), np.float32)
        emb_p[:vocab_size, :embedding_dim] = np.asarray(self.embedding)
        self.emb_p = jnp.asarray(emb_p)
        w_p = np.zeros((FPAD, FPAD), np.float32)
        w_p[:embedding_dim, :encode_dim] = np.asarray(self.W_c_T)
        self.w_p = jnp.asarray(w_p)
        b_p = np.zeros((1, FPAD), np.float32)
        b_p[0, :encode_dim] = np.asarray(self.b_c)
        self.b_p = jnp.asarray(b_p)

        self.node_list = []
        self.batch_node = None

    # ------------------------------------------------------------------ host
    # Mirrors traverse_mul() but only builds the int32 level schedule:
    # per level (frame): token id, owning batch row and parent node slot of
    # every node.  Frames are emitted post-order (children before parents),
    # exactly the order node_list is built in PyTorch.
    def _build_schedule(self, x, bs):
        frames = []

        def collect(node, batch_index):
            size = len(node)
            if not size:
                return None
            children_index, children = [], []
            b_idx = list(batch_index)
            toks = []
            for i in range(size):
                if node[i][0] != -1:
                    toks.append(int(node[i][0]))
                    temp = node[i][1:]
                    for j in range(len(temp)):
                        if temp[j][0] != -1:
                            if len(children_index) <= j:
                                children_index.append([i])
                                children.append([temp[j]])
                            else:
                                children_index[j].append(i)
                                children[j].append(temp[j])
                else:
                    b_idx[i] = -1
                    toks.append(self.zero_token)   # zero embedding -> W_c(0)=b_c
            frame = {"size": size, "tokens": toks, "owners": list(b_idx),
                     "parent": None}
            for c in range(len(children)):
                child_batch = [b_idx[i] for i in children_index[c]]
                child = collect(children[c], child_batch)
                if child is not None:
                    child["parent"] = (frame, list(children_index[c]))
            frames.append(frame)                   # post-order
            return frame

        collect(x, list(range(bs)))

        L = len(frames)
        max_size = max(f["size"] for f in frames)
        NP = max(SUBLANE, _round_up(max_size, SUBLANE))
        BS_PAD = _round_up(bs + 1, SUBLANE)
        trash_b = BS_PAD - 1          # scratch batch row for padded/stop nodes
        trash_g = L * NP              # scratch parent slot for roots/padding

        for fi, f in enumerate(frames):
            f["idx"] = fi

        tokens = np.full((L, NP), self.zero_token, np.int32)
        owners = np.full((L, NP), trash_b, np.int32)
        parents = np.full((L, NP), trash_g, np.int32)
        presence = np.zeros((bs,), np.int64)
        for fi, f in enumerate(frames):
            s = f["size"]
            tokens[fi, :s] = np.asarray(f["tokens"], np.int32)
            for i, b in enumerate(f["owners"]):
                if b >= 0:
                    owners[fi, i] = b
                    presence[b] += 1
            if f["parent"] is not None:
                pframe, prows = f["parent"]
                pidx = pframe["idx"]
                for i, r in enumerate(prows):
                    parents[fi, i] = pidx * NP + r

        # Each level stores a zero row (batch_node) for every batch element it
        # does not contain -> seed the running max with 0 for such rows and
        # -inf for rows present at every level.
        floor = np.zeros((BS_PAD, FPAD), np.float32)
        for b in range(bs):
            if presence[b] == L:
                floor[b, :] = -np.inf

        return (jnp.asarray(tokens), jnp.asarray(owners), jnp.asarray(parents),
                jnp.asarray(floor), L, NP, BS_PAD)

    # ------------------------------------------------------------------ fused
    def forward(self, x, bs):
        self.batch_size = bs
        tokens, owners, parents, floor, L, NP, BS_PAD = self._build_schedule(x, bs)
        return _tree_encode(tokens, owners, parents,
                            self.emb_p, self.w_p, self.b_p, floor,
                            L=L, NP=NP, BS_PAD=BS_PAD,
                            bs=bs, encode_dim=self.encode_dim)

    # -------------------------------------------------------------- reference
    # Pure-JAX mirror of the PyTorch recursion (for the correctness check).
    def _traverse_mul_ref(self, node, batch_index):
        size = len(node)
        if not size:
            return None
        index, children_index = [], []
        current_node, children = [], []
        for i in range(size):
            if node[i][0] != -1:
                index.append(i)
                current_node.append(node[i][0])
                temp = node[i][1:]
                for j in range(len(temp)):
                    if temp[j][0] != -1:
                        if len(children_index) <= j:
                            children_index.append([i])
                            children.append([temp[j]])
                        else:
                            children_index[j].append(i)
                            children[j].append(temp[j])
            else:
                batch_index[i] = -1
        emb = jnp.take(self.embedding,
                       jnp.asarray(current_node, jnp.int32), axis=0)
        scattered = jnp.zeros((size, self.encode_dim), jnp.float32)
        scattered = scattered.at[jnp.asarray(index, jnp.int32)].set(emb)
        batch_current = scattered @ self.W_c_T + self.b_c
        for c in range(len(children)):
            batch_children_index = [batch_index[i] for i in children_index[c]]
            tree = self._traverse_mul_ref(children[c], batch_children_index)
            if tree is not None:
                zeros = jnp.zeros((size, self.encode_dim), jnp.float32)
                zeros = zeros.at[jnp.asarray(children_index[c], jnp.int32)].set(tree)
                batch_current = batch_current + zeros
        batch_index = [i for i in batch_index if i != -1]
        b_in = jnp.asarray(batch_index, jnp.int32)
        self.node_list.append(self.batch_node.at[b_in].set(batch_current))
        return batch_current

    def forward_reference(self, x, bs):
        self.batch_size = bs
        self.batch_node = jnp.zeros((bs, self.encode_dim), jnp.float32)
        self.node_list = []
        self._traverse_mul_ref(x, list(range(bs)))
        stacked = jnp.stack(self.node_list)   # (L, bs, encode_dim)
        return jnp.max(stacked, axis=0)


# ----------------------------------------------------------------------------
if __name__ == "__main__":
    vocab_size = 50
    embedding_dim = 32
    encode_dim = 32
    bs = 3

    key = jax.random.PRNGKey(0)
    enc = BatchTreeEncoder(vocab_size, embedding_dim, encode_dim, bs, key)

    # Synthetic batch of ASTs: each node is [token_id, child, child, ...] with
    # [-1] as the "stop" padding child (skipped, as in the PyTorch reference).
    tree1 = [3, [5, [-1]], [7]]
    tree2 = [2, [4], [6, [1], [9, [-1]]]]
    tree3 = [8, [2], [4]]
    x = [tree1, tree2, tree3]

    out = jax.block_until_ready(enc.forward(x, bs))
    ref = jax.block_until_ready(enc.forward_reference(x, bs))

    assert out.shape == (bs, encode_dim), out.shape
    np.testing.assert_allclose(np.asarray(out), np.asarray(ref),
                               atol=1e-4, rtol=1e-4)

    print("KERNEL_OK")
</pallas_src>

<mosaic_0001>
module attributes {stable_mosaic.version = 11 : i64} {
  func.func @_fused_tree_kernel(%arg0: i32, %arg1: memref<5x8xi32, #tpu.memory_space<smem>>, %arg2: memref<5x8xi32, #tpu.memory_space<smem>>, %arg3: memref<5x8xi32, #tpu.memory_space<smem>>, %arg4: memref<56x128xf32, #tpu.memory_space<vmem>>, %arg5: memref<128x128xf32, #tpu.memory_space<vmem>>, %arg6: memref<1x128xf32, #tpu.memory_space<vmem>>, %arg7: memref<8x128xf32, #tpu.memory_space<vmem>>, %arg8: memref<8x128xf32, #tpu.memory_space<vmem>>, %arg9: memref<8x128xf32, #tpu.memory_space<vmem>>, %arg10: memref<48x128xf32, #tpu.memory_space<vmem>>, %arg11: memref<8x128xf32, #tpu.memory_space<vmem>>) attributes {dimension_semantics = [#tpu.dimension_semantics<arbitrary>], iteration_bounds = array<i64: 5>, scalar_prefetch = 3 : i64, scratch_operands = 3 : i64, tpu.core_type = #tpu.core_type<tc>, window_params = [{pipeline_mode = #tpu.pipeline_mode<synchronous>, transform_indices = @transform_0, window_bounds = array<i64: 56, 128>}, {pipeline_mode = #tpu.pipeline_mode<synchronous>, transform_indices = @transform_1, window_bounds = array<i64: 128, 128>}, {pipeline_mode = #tpu.pipeline_mode<synchronous>, transform_indices = @transform_2, window_bounds = array<i64: 1, 128>}, {pipeline_mode = #tpu.pipeline_mode<synchronous>, transform_indices = @transform_3, window_bounds = array<i64: 8, 128>}, {pipeline_mode = #tpu.pipeline_mode<synchronous>, transform_indices = @transform_4, window_bounds = array<i64: 8, 128>}]} {
    %c0_i32 = arith.constant 0 : i32
    %0 = arith.cmpi eq, %arg0, %c0_i32 : i32
    %1 = arith.extui %0 : i1 to i32
    %c0_i32_0 = arith.constant 0 : i32
    %2 = arith.cmpi ne, %1, %c0_i32_0 : i32
    scf.if %2 {
      %c0_81 = arith.constant 0 : index
      %c0_82 = arith.constant 0 : index
      %177 = vector.load %arg7[%c0_81, %c0_82] : memref<8x128xf32, #tpu.memory_space<vmem>>, vector<8x128xf32>
      %c0_83 = arith.constant 0 : index
      %c0_84 = arith.constant 0 : index
      %178 = vector.load %arg9[%c0_83, %c0_84] : memref<8x128xf32, #tpu.memory_space<vmem>>, vector<8x128xf32>
      tpu.vector_store %arg9[%c0_83, %c0_84], %177 {strides = array<i32>} : memref<8x128xf32, #tpu.memory_space<vmem>>, vector<8x128xf32>,
      %cst_85 = arith.constant 0.000000e+00 : f32
      %179 = vector.broadcast %cst_85 : f32 to vector<48x128xf32>
      %c0_86 = arith.constant 0 : index
      %c0_87 = arith.constant 0 : index
      %180 = vector.load %arg10[%c0_86, %c0_87] : memref<48x128xf32, #tpu.memory_space<vmem>>, vector<48x128xf32>
      tpu.vector_store %arg10[%c0_86, %c0_87], %179 {strides = array<i32>} : memref<48x128xf32, #tpu.memory_space<vmem>>, vector<48x128xf32>,
    } else {
    }
    %3 = arith.index_cast %arg0 : i32 to index
    %c0 = arith.constant 0 : index
    %4 = memref.load %arg1[%3, %c0] : memref<5x8xi32, #tpu.memory_space<smem>>
    %5 = arith.index_cast %4 : i32 to index
    %c0_1 = arith.constant 0 : index
    %6 = vector.load %arg4[%5, %c0_1] : memref<56x128xf32, #tpu.memory_space<vmem>>, vector<1x128xf32>
    %c0_2 = arith.constant 0 : index
    %c0_3 = arith.constant 0 : index
    %7 = vector.load %arg11[%c0_2, %c0_3] : memref<8x128xf32, #tpu.memory_space<vmem>>, vector<1x128xf32>
    tpu.vector_store %arg11[%c0_2, %c0_3], %6 {strides = array<i32>} : memref<8x128xf32, #tpu.memory_space<vmem>>, vector<1x128xf32>,
    %8 = arith.index_cast %arg0 : i32 to index
    %c1 = arith.constant 1 : index
    %9 = memref.load %arg1[%8, %c1] : memref<5x8xi32, #tpu.memory_space<smem>>
    %10 = arith.index_cast %9 : i32 to index
    %c0_4 = arith.constant 0 : index
    %11 = vector.load %arg4[%10, %c0_4] : memref<56x128xf32, #tpu.memory_space<vmem>>, vector<1x128xf32>
    %c1_5 = arith.constant 1 : index
    %c0_6 = arith.constant 0 : index
    %12 = vector.load %arg11[%c1_5, %c0_6] : memref<8x128xf32, #tpu.memory_space<vmem>>, vector<1x128xf32>
    tpu.vector_store %arg11[%c1_5, %c0_6], %11 {strides = array<i32>} : memref<8x128xf32, #tpu.memory_space<vmem>>, vector<1x128xf32>,
    %13 = arith.index_cast %arg0 : i32 to index
    %c2 = arith.constant 2 : index
    %14 = memref.load %arg1[%13, %c2] : memref<5x8xi32, #tpu.memory_space<smem>>
    %15 = arith.index_cast %14 : i32 to index
    %c0_7 = arith.constant 0 : index
    %16 = vector.load %arg4[%15, %c0_7] : memref<56x128xf32, #tpu.memory_space<vmem>>, vector<1x128xf32>
    %c2_8 = arith.constant 2 : index
    %c0_9 = arith.constant 0 : index
    %17 = vector.load %arg11[%c2_8, %c0_9] : memref<8x128xf32, #tpu.memory_space<vmem>>, vector<1x128xf32>
    tpu.vector_store %arg11[%c2_8, %c0_9], %16 {strides = array<i32>} : memref<8x128xf32, #tpu.memory_space<vmem>>, vector<1x128xf32>,
    %18 = arith.index_cast %arg0 : i32 to index
    %c3 = arith.constant 3 : index
    %19 = memref.load %arg1[%18, %c3] : memref<5x8xi32, #tpu.memory_space<smem>>
    %20 = arith.index_cast %19 : i32 to index
    %c0_10 = arith.constant 0 : index
    %21 = vector.load %arg4[%20, %c0_10] : memref<56x128xf32, #tpu.memory_space<vmem>>, vector<1x128xf32>
    %c3_11 = arith.constant 3 : index
    %c0_12 = arith.constant 0 : index
    %22 = vector.load %arg11[%c3_11, %c0_12] : memref<8x128xf32, #tpu.memory_space<vmem>>, vector<1x128xf32>
    tpu.vector_store %arg11[%c3_11, %c0_12], %21 {strides = array<i32>} : memref<8x128xf32, #tpu.memory_space<vmem>>, vector<1x128xf32>,
    %23 = arith.index_cast %arg0 : i32 to index
    %c4 = arith.constant 4 : index
    %24 = memref.load %arg1[%23, %c4] : memref<5x8xi32, #tpu.memory_space<smem>>
    %25 = arith.index_cast %24 : i32 to index
    %c0_13 = arith.constant 0 : index
    %26 = vector.load %arg4[%25, %c0_13] : memref<56x128xf32, #tpu.memory_space<vmem>>, vector<1x128xf32>
    %c4_14 = arith.constant 4 : index
    %c0_15 = arith.constant 0 : index
    %27 = vector.load %arg11[%c4_14, %c0_15] : memref<8x128xf32, #tpu.memory_space<vmem>>, vector<1x128xf32>
    tpu.vector_store %arg11[%c4_14, %c0_15], %26 {strides = array<i32>} : memref<8x128xf32, #tpu.memory_space<vmem>>, vector<1x128xf32>,
    %28 = arith.index_cast %arg0 : i32 to index
    %c5 = arith.constant 5 : index
    %29 = memref.load %arg1[%28, %c5] : memref<5x8xi32, #tpu.memory_space<smem>>
    %30 = arith.index_cast %29 : i32 to index
    %c0_16 = arith.constant 0 : index
    %31 = vector.load %arg4[%30, %c0_16] : memref<56x128xf32, #tpu.memory_space<vmem>>, vector<1x128xf32>
    %c5_17 = arith.constant 5 : index
    %c0_18 = arith.constant 0 : index
    %32 = vector.load %arg11[%c5_17, %c0_18] : memref<8x128xf32, #tpu.memory_space<vmem>>, vector<1x128xf32>
    tpu.vector_store %arg11[%c5_17, %c0_18], %31 {strides = array<i32>} : memref<8x128xf32, #tpu.memory_space<vmem>>, vector<1x128xf32>,
    %33 = arith.index_cast %arg0 : i32 to index
    %c6 = arith.constant 6 : index
    %34 = memref.load %arg1[%33, %c6] : memref<5x8xi32, #tpu.memory_space<smem>>
    %35 = arith.index_cast %34 : i32 to index
    %c0_19 = arith.constant 0 : index
    %36 = vector.load %arg4[%35, %c0_19] : memref<56x128xf32, #tpu.memory_space<vmem>>, vector<1x128xf32>
    %c6_20 = arith.constant 6 : index
    %c0_21 = arith.constant 0 : index
    %37 = vector.load %arg11[%c6_20, %c0_21] : memref<8x128xf32, #tpu.memory_space<vmem>>, vector<1x128xf32>
    tpu.vector_store %arg11[%c6_20, %c0_21], %36 {strides = array<i32>} : memref<8x128xf32, #tpu.memory_space<vmem>>, vector<1x128xf32>,
    %38 = arith.index_cast %arg0 : i32 to index
    %c7 = arith.constant 7 : index
    %39 = memref.load %arg1[%38, %c7] : memref<5x8xi32, #tpu.memory_space<smem>>
    %40 = arith.index_cast %39 : i32 to index
    %c0_22 = arith.constant 0 : index
    %41 = vector.load %arg4[%40, %c0_22] : memref<56x128xf32, #tpu.memory_space<vmem>>, vector<1x128xf32>
    %c7_23 = arith.constant 7 : index
    %c0_24 = arith.constant 0 : index
    %42 = vector.load %arg11[%c7_23, %c0_24] : memref<8x128xf32, #tpu.memory_space<vmem>>, vector<1x128xf32>
    tpu.vector_store %arg11[%c7_23, %c0_24], %41 {strides = array<i32>} : memref<8x128xf32, #tpu.memory_space<vmem>>, vector<1x128xf32>,
    %c0_25 = arith.constant 0 : index
    %c0_26 = arith.constant 0 : index
    %43 = vector.load %arg11[%c0_25, %c0_26] : memref<8x128xf32, #tpu.memory_space<vmem>>, vector<8x128xf32>
    %c0_27 = arith.constant 0 : index
    %c0_28 = arith.constant 0 : index
    %44 = vector.load %arg5[%c0_27, %c0_28] : memref<128x128xf32, #tpu.memory_space<vmem>>, vector<128x128xf32>
    %cst = arith.constant dense<0.000000e+00> : vector<8x128xf32>
    %45 = tpu.matmul %43, %44, %cst {dimension_numbers = #tpu.dot_dimension_numbers<[1], [0], [0], [1], [0, 0, 1, 1], [], []>} : vector<8x128xf32>, vector<128x128xf32>, vector<8x128xf32> -> vector<8x128xf32>
    %c0_29 = arith.constant 0 : index
    %c0_30 = arith.constant 0 : index
    %46 = vector.load %arg6[%c0_29, %c0_30] : memref<1x128xf32, #tpu.memory_space<vmem>>, vector<1x128xf32>
    %47 = vector.broadcast %46 : vector<1x128xf32> to vector<8x128xf32>
    %48 = arith.addf %45, %47 : vector<8x128xf32>
    %c8_i32 = arith.constant 8 : i32
    %49 = arith.muli %arg0, %c8_i32 : i32
    %50 = tpu.assume_multiple %49, 8 : i32
    %51 = arith.index_cast %50 : i32 to index
    %c0_31 = arith.constant 0 : index
    %52 = vector.load %arg10[%51, %c0_31] : memref<48x128xf32, #tpu.memory_space<vmem>>, vector<8x128xf32>
    %53 = arith.addf %48, %52 : vector<8x128xf32>
    %54 = vector.extract_strided_slice %53 {offsets = [0, 0], sizes = [1, 128], strides = [1, 1]} : vector<8x128xf32> to vector<1x128xf32>
    %55 = arith.index_cast %arg0 : i32 to index
    %c0_32 = arith.constant 0 : index
    %56 = memref.load %arg3[%55, %c0_32] : memref<5x8xi32, #tpu.memory_space<smem>>
    %57 = arith.index_cast %56 : i32 to index
    %c0_33 = arith.constant 0 : index
    %58 = vector.load %arg10[%57, %c0_33] : memref<48x128xf32, #tpu.memory_space<vmem>>, vector<1x128xf32>
    %59 = arith.addf %58, %54 : vector<1x128xf32>
    %60 = arith.index_cast %56 : i32 to index
    %c0_34 = arith.constant 0 : index
    %61 = vector.load %arg10[%60, %c0_34] : memref<48x128xf32, #tpu.memory_space<vmem>>, vector<1x128xf32>
    tpu.vector_store %arg10[%60, %c0_34], %59 {strides = array<i32>} : memref<48x128xf32, #tpu.memory_space<vmem>>, vector<1x128xf32>,
    %62 = arith.index_cast %arg0 : i32 to index
    %c0_35 = arith.constant 0 : index
    %63 = memref.load %arg2[%62, %c0_35] : memref<5x8xi32, #tpu.memory_space<smem>>
    %64 = arith.index_cast %63 : i32 to index
    %c0_36 = arith.constant 0 : index
    %65 = vector.load %arg9[%64, %c0_36] : memref<8x128xf32, #tpu.memory_space<vmem>>, vector<1x128xf32>
    %66 = arith.maximumf %65, %54 : vector<1x128xf32>
    %67 = arith.index_cast %63 : i32 to index
    %c0_37 = arith.constant 0 : index
    %68 = vector.load %arg9[%67, %c0_37] : memref<8x128xf32, #tpu.memory_space<vmem>>, vector<1x128xf32>
    tpu.vector_store %arg9[%67, %c0_37], %66 {strides = array<i32>} : memref<8x128xf32, #tpu.memory_space<vmem>>, vector<1x128xf32>,
    %69 = vector.extract_strided_slice %53 {offsets = [1, 0], sizes = [1, 128], strides = [1, 1]} : vector<8x128xf32> to vector<1x128xf32>
    %70 = arith.index_cast %arg0 : i32 to index
    %c1_38 = arith.constant 1 : index
    %71 = memref.load %arg3[%70, %c1_38] : memref<5x8xi32, #tpu.memory_space<smem>>
    %72 = arith.index_cast %71 : i32 to index
    %c0_39 = arith.constant 0 : index
    %73 = vector.load %arg10[%72, %c0_39] : memref<48x128xf32, #tpu.memory_space<vmem>>, vector<1x128xf32>
    %74 = arith.addf %73, %69 : vector<1x128xf32>
    %75 = arith.index_cast %71 : i32 to index
    %c0_40 = arith.constant 0 : index
    %76 = vector.load %arg10[%75, %c0_40] : memref<48x128xf32, #tpu.memory_space<vmem>>, vector<1x128xf32>
    tpu.vector_store %arg10[%75, %c0_40], %74 {strides = array<i32>} : memref<48x128xf32, #tpu.memory_space<vmem>>, vector<1x128xf32>,
    %77 = arith.index_cast %arg0 : i32 to index
    %c1_41 = arith.constant 1 : index
    %78 = memref.load %arg2[%77, %c1_41] : memref<5x8xi32, #tpu.memory_space<smem>>
    %79 = arith.index_cast %78 : i32 to index
    %c0_42 = arith.constant 0 : index
    %80 = vector.load %arg9[%79, %c0_42] : memref<8x128xf32, #tpu.memory_space<vmem>>, vector<1x128xf32>
    %81 = arith.maximumf %80, %69 : vector<1x128xf32>
    %82 = arith.index_cast %78 : i32 to index
    %c0_43 = arith.constant 0 : index
    %83 = vector.load %arg9[%82, %c0_43] : memref<8x128xf32, #tpu.memory_space<vmem>>, vector<1x128xf32>
    tpu.vector_store %arg9[%82, %c0_43], %81 {strides = array<i32>} : memref<8x128xf32, #tpu.memory_space<vmem>>, vector<1x128xf32>,
    %84 = vector.extract_strided_slice %53 {offsets = [2, 0], sizes = [1, 128], strides = [1, 1]} : vector<8x128xf32> to vector<1x128xf32>
    %85 = arith.index_cast %arg0 : i32 to index
    %c2_44 = arith.constant 2 : index
    %86 = memref.load %arg3[%85, %c2_44] : memref<5x8xi32, #tpu.memory_space<smem>>
    %87 = arith.index_cast %86 : i32 to index
    %c0_45 = arith.constant 0 : index
    %88 = vector.load %arg10[%87, %c0_45] : memref<48x128xf32, #tpu.memory_space<vmem>>, vector<1x128xf32>
    %89 = arith.addf %88, %84 : vector<1x128xf32>
    %90 = arith.index_cast %86 : i32 to index
    %c0_46 = arith.constant 0 : index
    %91 = vector.load %arg10[%90, %c0_46] : memref<48x128xf32, #tpu.memory_space<vmem>>, vector<1x128xf32>
    tpu.vector_store %arg10[%90, %c0_46], %89 {strides = array<i32>} : memref<48x128xf32, #tpu.memory_space<vmem>>, vector<1x128xf32>,
    %92 = arith.index_cast %arg0 : i32 to index
    %c2_47 = arith.constant 2 : index
    %93 = memref.load %arg2[%92, %c2_47] : memref<5x8xi32, #tpu.memory_space<smem>>
    %94 = arith.index_cast %93 : i32 to index
    %c0_48 = arith.constant 0 : index
    %95 = vector.load %arg9[%94, %c0_48] : memref<8x128xf32, #tpu.memory_space<vmem>>, vector<1x128xf32>
    %96 = arith.maximumf %95, %84 : vector<1x128xf32>
    %97 = arith.index_cast %93 : i32 to index
    %c0_49 = arith.constant 0 : index
    %98 = vector.load %arg9[%97, %c0_49] : memref<8x128xf32, #tpu.memory_space<vmem>>, vector<1x128xf32>
    tpu.vector_store %arg9[%97, %c0_49], %96 {strides = array<i32>} : memref<8x128xf32, #tpu.memory_space<vmem>>, vector<1x128xf32>,
    %99 = vector.extract_strided_slice %53 {offsets = [3, 0], sizes = [1, 128], strides = [1, 1]} : vector<8x128xf32> to vector<1x128xf32>
    %100 = arith.index_cast %arg0 : i32 to index
    %c3_50 = arith.constant 3 : index
    %101 = memref.load %arg3[%100, %c3_50] : memref<5x8xi32, #tpu.memory_space<smem>>
    %102 = arith.index_cast %101 : i32 to index
    %c0_51 = arith.constant 0 : index
    %103 = vector.load %arg10[%102, %c0_51] : memref<48x128xf32, #tpu.memory_space<vmem>>, vector<1x128xf32>
    %104 = arith.addf %103, %99 : vector<1x128xf32>
    %105 = arith.index_cast %101 : i32 to index
    %c0_52 = arith.constant 0 : index
    %106 = vector.load %arg10[%105, %c0_52] : memref<48x128xf32, #tpu.memory_space<vmem>>, vector<1x128xf32>
    tpu.vector_store %arg10[%105, %c0_52], %104 {strides = array<i32>} : memref<48x128xf32, #tpu.memory_space<vmem>>, vector<1x128xf32>,
    %107 = arith.index_cast %arg0 : i32 to index
    %c3_53 = arith.constant 3 : index
    %108 = memref.load %arg2[%107, %c3_53] : memref<5x8xi32, #tpu.memory_space<smem>>
    %109 = arith.index_cast %108 : i32 to index
    %c0_54 = arith.constant 0 : index
    %110 = vector.load %arg9[%109, %c0_54] : memref<8x128xf32, #tpu.memory_space<vmem>>, vector<1x128xf32>
    %111 = arith.maximumf %110, %99 : vector<1x128xf32>
    %112 = arith.index_cast %108 : i32 to index
    %c0_55 = arith.constant 0 : index
    %113 = vector.load %arg9[%112, %c0_55] : memref<8x128xf32, #tpu.memory_space<vmem>>, vector<1x128xf32>
    tpu.vector_store %arg9[%112, %c0_55], %111 {strides = array<i32>} : memref<8x128xf32, #tpu.memory_space<vmem>>, vector<1x128xf32>,
    %114 = vector.extract_strided_slice %53 {offsets = [4, 0], sizes = [1, 128], strides = [1, 1]} : vector<8x128xf32> to vector<1x128xf32>
    %115 = arith.index_cast %arg0 : i32 to index
    %c4_56 = arith.constant 4 : index
    %116 = memref.load %arg3[%115, %c4_56] : memref<5x8xi32, #tpu.memory_space<smem>>
    %117 = arith.index_cast %116 : i32 to index
    %c0_57 = arith.constant 0 : index
    %118 = vector.load %arg10[%117, %c0_57] : memref<48x128xf32, #tpu.memory_space<vmem>>, vector<1x128xf32>
    %119 = arith.addf %118, %114 : vector<1x128xf32>
    %120 = arith.index_cast %116 : i32 to index
    %c0_58 = arith.constant 0 : index
    %121 = vector.load %arg10[%120, %c0_58] : memref<48x128xf32, #tpu.memory_space<vmem>>, vector<1x128xf32>
    tpu.vector_store %arg10[%120, %c0_58], %119 {strides = array<i32>} : memref<48x128xf32, #tpu.memory_space<vmem>>, vector<1x128xf32>,
    %122 = arith.index_cast %arg0 : i32 to index
    %c4_59 = arith.constant 4 : index
    %123 = memref.load %arg2[%122, %c4_59] : memref<5x8xi32, #tpu.memory_space<smem>>
    %124 = arith.index_cast %123 : i32 to index
    %c0_60 = arith.constant 0 : index
    %125 = vector.load %arg9[%124, %c0_60] : memref<8x128xf32, #tpu.memory_space<vmem>>, vector<1x128xf32>
    %126 = arith.maximumf %125, %114 : vector<1x128xf32>
    %127 = arith.index_cast %123 : i32 to index
    %c0_61 = arith.constant 0 : index
    %128 = vector.load %arg9[%127, %c0_61] : memref<8x128xf32, #tpu.memory_space<vmem>>, vector<1x128xf32>
    tpu.vector_store %arg9[%127, %c0_61], %126 {strides = array<i32>} : memref<8x128xf32, #tpu.memory_space<vmem>>, vector<1x128xf32>,
    %129 = vector.extract_strided_slice %53 {offsets = [5, 0], sizes = [1, 128], strides = [1, 1]} : vector<8x128xf32> to vector<1x128xf32>
    %130 = arith.index_cast %arg0 : i32 to index
    %c5_62 = arith.constant 5 : index
    %131 = memref.load %arg3[%130, %c5_62] : memref<5x8xi32, #tpu.memory_space<smem>>
    %132 = arith.index_cast %131 : i32 to index
    %c0_63 = arith.constant 0 : index
    %133 = vector.load %arg10[%132, %c0_63] : memref<48x128xf32, #tpu.memory_space<vmem>>, vector<1x128xf32>
    %134 = arith.addf %133, %129 : vector<1x128xf32>
    %135 = arith.index_cast %131 : i32 to index
    %c0_64 = arith.constant 0 : index
    %136 = vector.load %arg10[%135, %c0_64] : memref<48x128xf32, #tpu.memory_space<vmem>>, vector<1x128xf32>
    tpu.vector_store %arg10[%135, %c0_64], %134 {strides = array<i32>} : memref<48x128xf32, #tpu.memory_space<vmem>>, vector<1x128xf32>,
    %137 = arith.index_cast %arg0 : i32 to index
    %c5_65 = arith.constant 5 : index
    %138 = memref.load %arg2[%137, %c5_65] : memref<5x8xi32, #tpu.memory_space<smem>>
    %139 = arith.index_cast %138 : i32 to index
    %c0_66 = arith.constant 0 : index
    %140 = vector.load %arg9[%139, %c0_66] : memref<8x128xf32, #tpu.memory_space<vmem>>, vector<1x128xf32>
    %141 = arith.maximumf %140, %129 : vector<1x128xf32>
    %142 = arith.index_cast %138 : i32 to index
    %c0_67 = arith.constant 0 : index
    %143 = vector.load %arg9[%142, %c0_67] : memref<8x128xf32, #tpu.memory_space<vmem>>, vector<1x128xf32>
    tpu.vector_store %arg9[%142, %c0_67], %141 {strides = array<i32>} : memref<8x128xf32, #tpu.memory_space<vmem>>, vector<1x128xf32>,
    %144 = vector.extract_strided_slice %53 {offsets = [6, 0], sizes = [1, 128], strides = [1, 1]} : vector<8x128xf32> to vector<1x128xf32>
    %145 = arith.index_cast %arg0 : i32 to index
    %c6_68 = arith.constant 6 : index
    %146 = memref.load %arg3[%145, %c6_68] : memref<5x8xi32, #tpu.memory_space<smem>>
    %147 = arith.index_cast %146 : i32 to index
    %c0_69 = arith.constant 0 : index
    %148 = vector.load %arg10[%147, %c0_69] : memref<48x128xf32, #tpu.memory_space<vmem>>, vector<1x128xf32>
    %149 = arith.addf %148, %144 : vector<1x128xf32>
    %150 = arith.index_cast %146 : i32 to index
    %c0_70 = arith.constant 0 : index
    %151 = vector.load %arg10[%150, %c0_70] : memref<48x128xf32, #tpu.memory_space<vmem>>, vector<1x128xf32>
    tpu.vector_store %arg10[%150, %c0_70], %149 {strides = array<i32>} : memref<48x128xf32, #tpu.memory_space<vmem>>, vector<1x128xf32>,
    %152 = arith.index_cast %arg0 : i32 to index
    %c6_71 = arith.constant 6 : index
    %153 = memref.load %arg2[%152, %c6_71] : memref<5x8xi32, #tpu.memory_space<smem>>
    %154 = arith.index_cast %153 : i32 to index
    %c0_72 = arith.constant 0 : index
    %155 = vector.load %arg9[%154, %c0_72] : memref<8x128xf32, #tpu.memory_space<vmem>>, vector<1x128xf32>
    %156 = arith.maximumf %155, %144 : vector<1x128xf32>
    %157 = arith.index_cast %153 : i32 to index
    %c0_73 = arith.constant 0 : index
    %158 = vector.load %arg9[%157, %c0_73] : memref<8x128xf32, #tpu.memory_space<vmem>>, vector<1x128xf32>
    tpu.vector_store %arg9[%157, %c0_73], %156 {strides = array<i32>} : memref<8x128xf32, #tpu.memory_space<vmem>>, vector<1x128xf32>,
    %159 = vector.extract_strided_slice %53 {offsets = [7, 0], sizes = [1, 128], strides = [1, 1]} : vector<8x128xf32> to vector<1x128xf32>
    %160 = arith.index_cast %arg0 : i32 to index
    %c7_74 = arith.constant 7 : index
    %161 = memref.load %arg3[%160, %c7_74] : memref<5x8xi32, #tpu.memory_space<smem>>
    %162 = arith.index_cast %161 : i32 to index
    %c0_75 = arith.constant 0 : index
    %163 = vector.load %arg10[%162, %c0_75] : memref<48x128xf32, #tpu.memory_space<vmem>>, vector<1x128xf32>
    %164 = arith.addf %163, %159 : vector<1x128xf32>
    %165 = arith.index_cast %161 : i32 to index
    %c0_76 = arith.constant 0 : index
    %166 = vector.load %arg10[%165, %c0_76] : memref<48x128xf32, #tpu.memory_space<vmem>>, vector<1x128xf32>
    tpu.vector_store %arg10[%165, %c0_76], %164 {strides = array<i32>} : memref<48x128xf32, #tpu.memory_space<vmem>>, vector<1x128xf32>,
    %167 = arith.index_cast %arg0 : i32 to index
    %c7_77 = arith.constant 7 : index
    %168 = memref.load %arg2[%167, %c7_77] : memref<5x8xi32, #tpu.memory_space<smem>>
    %169 = arith.index_cast %168 : i32 to index
    %c0_78 = arith.constant 0 : index
    %170 = vector.load %arg9[%169, %c0_78] : memref<8x128xf32, #tpu.memory_space<vmem>>, vector<1x128xf32>
    %171 = arith.maximumf %170, %159 : vector<1x128xf32>
    %172 = arith.index_cast %168 : i32 to index
    %c0_79 = arith.constant 0 : index
    %173 = vector.load %arg9[%172, %c0_79] : memref<8x128xf32, #tpu.memory_space<vmem>>, vector<1x128xf32>
    tpu.vector_store %arg9[%172, %c0_79], %171 {strides = array<i32>} : memref<8x128xf32, #tpu.memory_space<vmem>>, vector<1x128xf32>,
    %c4_i32 = arith.constant 4 : i32
    %174 = arith.cmpi eq, %arg0, %c4_i32 : i32
    %175 = arith.extui %174 : i1 to i32
    %c0_i32_80 = arith.constant 0 : i32
    %176 = arith.cmpi ne, %175, %c0_i32_80 : i32
    scf.if %176 {
      %c0_81 = arith.constant 0 : index
      %c0_82 = arith.constant 0 : index
      %177 = vector.load %arg9[%c0_81, %c0_82] : memref<8x128xf32, #tpu.memory_space<vmem>>, vector<8x128xf32>
      %c0_83 = arith.constant 0 : index
      %c0_84 = arith.constant 0 : index
      %178 = vector.load %arg8[%c0_83, %c0_84] : memref<8x128xf32, #tpu.memory_space<vmem>>, vector<8x128xf32>
      tpu.vector_store %arg8[%c0_83, %c0_84], %177 {strides = array<i32>} : memref<8x128xf32, #tpu.memory_space<vmem>>, vector<8x128xf32>,
    } else {
    }
    return
  }
  func.func @transform_0(%arg0: i32, %arg1: memref<5x8xi32, #tpu.memory_space<smem>>, %arg2: memref<5x8xi32, #tpu.memory_space<smem>>, %arg3: memref<5x8xi32, #tpu.memory_space<smem>>) -> (i32, i32) {
    %c0_i32 = arith.constant 0 : i32
    %c0_i32_0 = arith.constant 0 : i32
    %c0_i32_1 = arith.constant 0 : i32
    return %c0_i32, %c0_i32_0 : i32, i32
  }
  func.func @transform_1(%arg0: i32, %arg1: memref<5x8xi32, #tpu.memory_space<smem>>, %arg2: memref<5x8xi32, #tpu.memory_space<smem>>, %arg3: memref<5x8xi32, #tpu.memory_space<smem>>) -> (i32, i32) {
    %c0_i32 = arith.constant 0 : i32
    %c0_i32_0 = arith.constant 0 : i32
    %c0_i32_1 = arith.constant 0 : i32
    return %c0_i32, %c0_i32_0 : i32, i32
  }
  func.func @transform_2(%arg0: i32, %arg1: memref<5x8xi32, #tpu.memory_space<smem>>, %arg2: memref<5x8xi32, #tpu.memory_space<smem>>, %arg3: memref<5x8xi32, #tpu.memory_space<smem>>) -> (i32, i32) {
    %c0_i32 = arith.constant 0 : i32
    %c0_i32_0 = arith.constant 0 : i32
    %c0_i32_1 = arith.constant 0 : i32
    return %c0_i32, %c0_i32_0 : i32, i32
  }
  func.func @transform_3(%arg0: i32, %arg1: memref<5x8xi32, #tpu.memory_space<smem>>, %arg2: memref<5x8xi32, #tpu.memory_space<smem>>, %arg3: memref<5x8xi32, #tpu.memory_space<smem>>) -> (i32, i32) {
    %c0_i32 = arith.constant 0 : i32
    %c0_i32_0 = arith.constant 0 : i32
    %c0_i32_1 = arith.constant 0 : i32
    return %c0_i32, %c0_i32_0 : i32, i32
  }
  func.func @transform_4(%arg0: i32, %arg1: memref<5x8xi32, #tpu.memory_space<smem>>, %arg2: memref<5x8xi32, #tpu.memory_space<smem>>, %arg3: memref<5x8xi32, #tpu.memory_space<smem>>) -> (i32, i32) {
    %c0_i32 = arith.constant 0 : i32
    %c0_i32_0 = arith.constant 0 : i32
    %c0_i32_1 = arith.constant 0 : i32
    return %c0_i32, %c0_i32_0 : i32, i32
  }
}

</mosaic_0001>

<bundles_post_ra>
// kernel: _tree_encode.1
= control target key start
LH: loop header
LB: loop body
LE: loop exit
PB: predicated region body
PF: predicated region fallthrough
CT: control target
= control target key end

     0   :  { %s1016_s0 = inlined_call_operand.hbm [shape: s32[5,8], index: 0, kind: input, shape index: {}]   ;;  %s1017_s3 = inlined_call_operand.hbm [shape: f32[56,128], index: 3, kind: input, shape index: {}]   ;;  %s1018_s4 = inlined_call_operand.hbm [shape: f32[128,128], index: 4, kind: input, shape index: {}]   ;;  %s1019_s5 = inlined_call_operand.vmem [shape: f32[1,128], index: 5, kind: input, shape index: {}]   ;;  %s1020_s6 = inlined_call_operand.vmem [shape: f32[8,128], index: 6, kind: input, shape index: {}]   ;;  %s1021_s7 = inlined_call_operand.vmem [shape: f32[8,128], index: 7, kind: output, shape index: {}]   ;;  %s1022_s1 = inlined_call_operand.hbm [shape: s32[5,8], index: 1, kind: input, shape index: {}]   ;;  %s1023_s2 = inlined_call_operand.hbm [shape: s32[5,8], index: 2, kind: input, shape index: {}]  }
   0x1   :  { %s647_s26 = scalar_lea.hbm %s1016_s0, 128 }
   0x2   :  { %p648_p0 = scmp.ne.s32.totalorder %s1016_s0, %s647_s26  ;;  %p651_p1 = scmp.lt.u32.totalorder %s647_s26, %s1016_s0 }
   0x4   :  { %p653_p2 = pnand %p651_p1, %p648_p0 }
   0x6   :  { %656 = shalt.err (!%p653_p2)  }
   0x7   :  { %s751_s8 = smov [#allocation6]   ;;  %s657_s13 = scalar_lea.hbm %s1022_s1, 128 }
   0x8   :  { %13 = dma.hbm_to_smem %s1016_s0, 128, %s751_s8, [#allocation5] }
   0x9   :  { %p658_p3 = scmp.ne.s32.totalorder %s1022_s1, %s657_s13  ;;  %p661_p4 = scmp.lt.u32.totalorder %s657_s13, %s1022_s1 }
   0xb   :  { %p663_p5 = pnand %p661_p4, %p658_p3 }
   0xd   :  { %666 = shalt.err (!%p663_p5)  }
   0xe   :  { %s752_s18 = smov [#allocation7]   ;;  %s667_s22 = scalar_lea.hbm %s1023_s2, 128 }
   0xf   :  { %15 = dma.hbm_to_smem %s1022_s1, 128, %s752_s18, [#allocation5] }
  0x10   :  { %p668_p6 = scmp.ne.s32.totalorder %s1023_s2, %s667_s22  ;;  %p671_p7 = scmp.lt.u32.totalorder %s667_s22, %s1023_s2 }
  0x12   :  { %p673_p8 = pnand %p671_p7, %p668_p6 }
  0x14   :  { %676 = shalt.err (!%p673_p8)  }
  0x15   :  { %s753_s27 = smov [#allocation8]  }
  0x16   :  { %17 = dma.hbm_to_smem %s1023_s2, 128, %s753_s27, [#allocation5] }
  0x17   :  { %737 = dma.done.wait [#allocation5], 384 }
  0x18   :  { %738 = vsyncadd [#allocation5], 4294966912 }
  0x19   :  { %19 = sfence }
  0x1a   :  { %20 = vsyncpa [#allocation10], 0 }
  0x1b   :  { %21 = vsyncpa [#allocation12], 0  ;;  %s838_s1 = smov 0  }
  0x1c LB: > { %s844_s30 = sadd.s32 4294967295, %s749_s1   ;;  %p520_p9 = scmp.ge.s32.totalorder %s749_s1, 1  ;;  %s749_s1 = sphi %s838_s1, %s27_s1  }
  0x1d   : > { %p137_p10 = scmp.lt.s32.totalorder %s749_s1, 6  ;;  %s754_s2 = smov [#allocation9]  }
  0x1e   : > { %s149_s8 = sshll.u32 %s754_s2, 4  ;;  %p1024_p13 = scmp.eq.s32.totalorder %s844_s30, 0  ;;  %s150_s8 = int_to_ptr.vmem [resolvable:$true] %s149_s8 }
  0x1f   : > { %p849_p12 = pnand %p520_p9, %p137_p10  ;;  %s755_s10 = smov [#allocation11]  }
  0x20   : > { %s162_s11 = sshll.u32 %s755_s10, 4  ;;  %s677_s15 = scalar_lea.hbm %s1017_s3, 896  ;;  %s862_s11 = int_to_ptr.vmem [resolvable:$true] %s162_s11 }
  0x21   : > { %s1026_s9 = scalar_select %p849_p12, 1, 0 }
  0x22   : > { %p617_p0 = pneg %p849_p12  ;;  %p678_p2 = scmp.ne.s32.totalorder %s1017_s3, %s677_s15 }
  0x23   : > { %p684_p6 = scmp.lt.u32.totalorder %s677_s15, %s1017_s3 }
  0x24   : > { %p858_p1 = pnand %p1024_p13, %p617_p0 }
  0x26   : > { %p679_p3 = pneg %p858_p1 }
  0x28   : > { %p680_p4 = pnand %p679_p3, %p678_p2 }
  0x2a   : > { %p681_p5 = pneg %p680_p4 }
  0x2c   : > { %p686_p7 = pnand %p684_p6, %p681_p5 }
  0x2e   : > { %689 = shalt.err (!%p686_p7)
}
  0x2f   : > { %s690_s20 = scalar_lea.vmem %s150_s8, 896  ;;  %p698_p0 = scmp.lt.s32.totalorder %s150_s8, %s150_s8 }
  0x30   : > { %p691_p8 = scmp.ne.s32.totalorder %s150_s8, %s690_s20  ;;  %p699_p11 = scmp.lt.s32.totalorder %s690_s20, %s690_s20 }
  0x32   : > { %p693_p9 = pnand %p691_p8, %p679_p3  ;;  %p700_p13 = por %p699_p11, %p698_p0 }
  0x34   : > { %p694_p10 = pneg %p693_p9 }
  0x36   : > { %p701_p12 = pnand %p700_p13, %p694_p10 }
  0x38   : > { %704 = shalt.err (!%p701_p12)
}
  0x39   : > { %s756_s0 = smov 128   ;;  %s757_s21 = smov 8  }
  0x3a   : > { %620 = dma.hbm_to_vmem [thread:$0]  (!%p858_p1), %s1017_s3, 896, %s150_s8, [#allocation10], %s756_s0, %s756_s0, %s757_s21  }
  0x3b   : > { %s705_s26 = scalar_lea.hbm %s1018_s4, 2048 }
  0x3c   : > { %p706_p2 = scmp.ne.s32.totalorder %s1018_s4, %s705_s26  ;;  %p712_p13 = scmp.lt.u32.totalorder %s705_s26, %s1018_s4 }
  0x3e   : > { %p708_p11 = pnand %p706_p2, %p679_p3 }
  0x40   : > { %p709_p12 = pneg %p708_p11 }
  0x42   : > { %p714_p4 = pnand %p712_p13, %p709_p12 }
  0x44   : > { %717 = shalt.err (!%p714_p4)
}
  0x45   : > { %s718_s8 = scalar_lea.vmem %s862_s11, 2048  ;;  %p726_p8 = scmp.lt.s32.totalorder %s862_s11, %s862_s11 }
  0x46   : > { %p719_p5 = scmp.ne.s32.totalorder %s862_s11, %s718_s8  ;;  %p727_p9 = scmp.lt.s32.totalorder %s718_s8, %s718_s8 }
  0x48   : > { %p721_p6 = pnand %p719_p5, %p679_p3  ;;  %p728_p10 = por %p727_p9, %p726_p8 }
  0x4a   : > { %p722_p7 = pneg %p721_p6 }
  0x4c   : > { %p729_p0 = pnand %p728_p10, %p722_p7 }
  0x4e   : > { %732 = shalt.err (!%p729_p0)
}
  0x4f   : > { %623 = dma.hbm_to_vmem [thread:$0]  (!%p858_p1), %s1018_s4, 2048, %s862_s11, [#allocation12], %s756_s0, %s756_s0, %s757_s21  }
  0x50   : > { %p1028_p2 = scmp.ne.s32.totalorder %s1026_s9, 0 }
  0x51   : > { %p1029_p11 = scmp.eq.s32.totalorder (!%p1028_p2), %s844_s30, 0 }
  0x52   : > { %184 = sbr.rel (%p1028_p2) target bundleno = 435 (0x1b3), region = 36 }
  0x59   : > { %740 = dma.done.wait (%p1029_p11), [#allocation10], 896   ;;  %p1030_p3 = pmov %p1029_p11 }
  0x5b   : > { %742 = vsyncadd (%p1030_p3), [#allocation10], 4294966400  ;;  %p1031_p12 = pmov %p1030_p3 }
  0x5c   : > { %p1032_p13 = pmov %p1030_p3 }
  0x5d   : > { %744 = dma.done.wait (%p1031_p12), [#allocation12], 2048  }
  0x5e   : > { %746 = vsyncadd (%p1032_p13), [#allocation12], 4294965248  ;;  %p1033_p4 = scmp.ne.s32.totalorder %s844_s30, 0 }
  0x5f   : > { %v208_v0 = vld [vmem:[%s1020_s6] sm:$0xff] (!%p1033_p4)  ;;  %v758_v1 = vmov (!%p1033_p4), 0.0  }
  0x60   : > { %207 = sbr.rel (%p1033_p4) target bundleno = 103 (0x67), region = 48  ;;  %209 = vst [vmem:[#allocation2] sm:$0xff] (!%p1033_p4), %v208_v0  ;;  %210 = vst [vmem:[#allocation3] sm:$0xff] (!%p1033_p4), %v758_v1 }
  0x61   : > { %211 = vst [vmem:[#allocation3 + $0x8] sm:$0xff] (!%p1033_p4), %v758_v1  ;;  %212 = vst [vmem:[#allocation3 + $0x10] sm:$0xff] (!%p1033_p4), %v758_v1 }
  0x62   : > { %213 = vst [vmem:[#allocation3 + $0x18] sm:$0xff] (!%p1033_p4), %v758_v1  ;;  %214 = vst [vmem:[#allocation3 + $0x20] sm:$0xff] (!%p1033_p4), %v758_v1 }
  0x63   : > { %215 = vst [vmem:[#allocation3 + $0x28] sm:$0xff] (!%p1033_p4), %v758_v1 }
  0x67 PF: > { %v257_v2 = vld [vmem:[#allocation11] sm:$0xff]  ;;  %v258_v3 = vld [vmem:[#allocation11 + $0x8] sm:$0xff]  ;;  %v259_v4 = vld [vmem:[#allocation11 + $0x10] sm:$0xff]  ;;  %v759_v5 = vmov 0.0|0.0   ;;  %vm760_vm0 = vmmov 0   ;;  %v761_v8 = vmov 0.0  }
  0x68   : > { %585 = vmatprep.subr.bf16.mxu0 %v759_v5  ;;  %v586_v6 = vpack.c.bf16 %v258_v3, %v257_v2  ;;  %v260_v7 = vld [vmem:[#allocation11 + $0x18] sm:$0xff]  ;;  %582 = vmatprep.mubr.msk.f32.mxu0 %vm760_vm0, %v761_v8  ;;  %s928_s9 = sshll.u32 %s844_s30, 7  ;;  %v261_v10 = vld [vmem:[#allocation11 + $0x20] sm:$0xff]  ;;  %v262_v11 = vld [vmem:[#allocation11 + $0x28] sm:$0xff]  ;;  %p530_p1 = scmp.ne.s32.totalorder %s844_s30, 4 }
  0x69   : > { %s217_s14 = sld [smem:[#allocation6 + %s928_s9]]  ;;  %s932_s15 = sadd.s32 1, %s928_s9  ;;  %v589_v9 = vpack.c.bf16 %v260_v7, %v259_v4  ;;  %v592_v12 = vpack.c.bf16 %v262_v11, %v261_v10  ;;  %v263_v13 = vld [vmem:[#allocation11 + $0x30] sm:$0xff]  ;;  %v264_v14 = vld [vmem:[#allocation11 + $0x38] sm:$0xff]  ;;  %v265_v19 = vld [vmem:[#allocation11 + $0x40] sm:$0xff] }
  0x6a   : > { %587 = vmatpush3.bf16.msra.mxu0 %v586_v6  ;;  %s222_s16 = sld [smem:[#allocation6 + %s932_s15]]  ;;  %s936_s17 = sadd.s32 2, %s928_s9  ;;  %v595_v17 = vpack.c.bf16 %v264_v14, %v263_v13  ;;  %v266_v20 = vld [vmem:[#allocation11 + $0x48] sm:$0xff]  ;;  %v267_v26 = vld [vmem:[#allocation11 + $0x50] sm:$0xff]  ;;  %v268_v27 = vld [vmem:[#allocation11 + $0x58] sm:$0xff] }
  0x6b   : > { %588 = vmatprep.subr.bf16.mxu0 %v759_v5  ;;  %s227_s18 = sld [smem:[#allocation6 + %s936_s17]]  ;;  %s941_s19 = sadd.s32 3, %s928_s9  ;;  %v598_v24 = vpack.c.bf16 %v266_v20, %v265_v19  ;;  %v601_v29 = vpack.c.bf16 %v268_v27, %v267_v26  ;;  %v269_v30 = vld [vmem:[#allocation11 + $0x60] sm:$0xff]  ;;  %v270_v31 = vld [vmem:[#allocation11 + $0x68] sm:$0xff]  ;;  %v271_v33 = vld [vmem:[#allocation11 + $0x70] sm:$0xff] }
  0x6c   : > { %s944_s20 = sld [smem:[#allocation6 + %s941_s19]]  ;;  %s947_s0 = sadd.s32 4, %s928_s9  ;;  %v604_v32 = vpack.c.bf16 %v270_v31, %v269_v30  ;;  %v272_v34 = vld [vmem:[#allocation11 + $0x78] sm:$0xff]  ;;  %v528_v37 = vld [vmem:[%s1019_s5] ss:$0 sm:$0xff] }
  0x6d   : > { %s950_s21 = sld [smem:[#allocation6 + %s947_s0]]  ;;  %s953_s22 = sadd.s32 5, %s928_s9  ;;  %v607_v35 = vpack.c.bf16 %v272_v34, %v271_v33 }
  0x6e   : > { %590 = vmatpush3.bf16.msra.mxu0 %v589_v9  ;;  %s956_s23 = sld [smem:[#allocation6 + %s953_s22]]  ;;  %s959_s24 = sadd.s32 6, %s928_s9 }
  0x6f   : > { %591 = vmatprep.subr.bf16.mxu0 %v759_v5  ;;  %s963_s25 = sld [smem:[#allocation6 + %s959_s24]]  ;;  %s218_s26 = scalar_lea.vmem [#allocation9], %s217_s14 }
  0x70   : > { %v219_v15 = vld [vmem:[%s218_s26] sm:$0x1]  ;;  %s966_s27 = sadd.s32 7, %s928_s9  ;;  %s223_s28 = scalar_lea.vmem [#allocation9], %s222_s16 }
  0x71   : > { %220 = vst [vmem:[#allocation4] sm:$0x1] %v219_v15  ;;  %v224_v16 = vld [vmem:[%s223_s28] sm:$0x1]  ;;  %s252_s29 = sld [smem:[#allocation6 + %s966_s27]]  ;;  %s228_s2 = scalar_lea.vmem [#allocation9], %s227_s18 }
  0x72   : > { %593 = vmatpush3.bf16.msra.mxu0 %v592_v12  ;;  %225 = vst [vmem:[#allocation4 + $0x1] sm:$0x1] %v224_v16  ;;  %v229_v18 = vld [vmem:[%s228_s2] sm:$0x1]  ;;  %s233_s8 = scalar_lea.vmem [#allocation9], %s944_s20  ;;  %s354_s14 = sld [smem:[#allocation8 + %s928_s9]] }
  0x73   : > { %594 = vmatprep.subr.bf16.mxu0 %v759_v5  ;;  %230 = vst [vmem:[#allocation4 + $0x2] sm:$0x1] %v229_v18  ;;  %v234_v21 = vld [vmem:[%s233_s8] sm:$0x1]  ;;  %s238_s10 = scalar_lea.vmem [#allocation9], %s950_s21  ;;  %s359_s16 = sld [smem:[#allocation7 + %s928_s9]] }
  0x74   : > { %235 = vst [vmem:[#allocation4 + $0x3] sm:$0x1] %v234_v21  ;;  %v239_v22 = vld [vmem:[%s238_s10] sm:$0x1]  ;;  %s243_s13 = scalar_lea.vmem [#allocation9], %s956_s23  ;;  %s529_s18 = sshll.u32 %s844_s30, 3 }
  0x75   : > { %240 = vst [vmem:[#allocation4 + $0x4] sm:$0x1] %v239_v22  ;;  %v244_v23 = vld [vmem:[%s243_s13] sm:$0x1]  ;;  %s248_s12 = scalar_lea.vmem [#allocation9], %s963_s25  ;;  %s351_s23 = scalar_lea.vmem [#allocation3], %s529_s18 }
  0x76   : > { %596 = vmatpush3.bf16.msra.mxu0 %v595_v17  ;;  %245 = vst [vmem:[#allocation4 + $0x5] sm:$0x1] %v244_v23  ;;  %v249_v25 = vld [vmem:[%s248_s12] sm:$0x1]  ;;  %s364_s28 = sld [smem:[#allocation8 + %s932_s15]] }
  0x77   : > { %597 = vmatprep.subr.bf16.mxu0 %v759_v5  ;;  %250 = vst [vmem:[#allocation4 + $0x6] sm:$0x1] %v249_v25  ;;  %s253_s11 = scalar_lea.vmem [#allocation9], %s252_s29  ;;  %v352_v39 = vld [vmem:[%s351_s23] sm:$0xff]  ;;  %s372_s29 = sld [smem:[#allocation7 + %s932_s15]] }
  0x78   : > { %v254_v28 = vld [vmem:[%s253_s11] sm:$0x1]  ;;  %s355_s25 = scalar_lea.vmem [#allocation3], %s354_s14  ;;  %s377_s9 = sld [smem:[#allocation8 + %s936_s17]] }
  0x79   : > { %255 = vst [vmem:[#allocation4 + $0x7] sm:$0x1] %v254_v28  ;;  %v356_v42 = vld [vmem:[%s355_s25] sm:$0x1]  ;;  %s360_s26 = scalar_lea.vmem [#allocation2], %s359_s16  ;;  %s384_s2 = sld [smem:[#allocation7 + %s936_s17]] }
  0x7a   : > { %599 = vmatpush3.bf16.msra.mxu0 %v598_v24  ;;  %v361_v43 = vld [vmem:[%s360_s26] sm:$0x1]  ;;  %s389_s15 = sld [smem:[#allocation8 + %s941_s19]] }
  0x7b   : > { %600 = vmatprep.subr.bf16.mxu0 %v759_v5  ;;  %s396_s13 = sld [smem:[#allocation7 + %s941_s19]] }
  0x7c   : > { %s365_s8 = scalar_lea.vmem [#allocation3], %s364_s28  ;;  %s401_s17 = sld [smem:[#allocation8 + %s947_s0]] }
  0x7d   : > { %s373_s10 = scalar_lea.vmem [#allocation2], %s372_s29  ;;  %s408_s14 = sld [smem:[#allocation7 + %s947_s0]] }
  0x7e   : > { %602 = vmatpush3.bf16.msra.mxu0 %v601_v29  ;;  %s378_s12 = scalar_lea.vmem [#allocation3], %s377_s9  ;;  %s413_s19 = sld [smem:[#allocation8 + %s953_s22]] }
  0x7f   : > { %603 = vmatprep.subr.bf16.mxu0 %v759_v5  ;;  %s385_s11 = scalar_lea.vmem [#allocation2], %s384_s2  ;;  %s420_s20 = sld [smem:[#allocation7 + %s953_s22]] }
  0x80   : > { %v256_v36 = vld [vmem:[#allocation4] sm:$0xff]  ;;  %s390_s16 = scalar_lea.vmem [#allocation3], %s389_s15  ;;  %s425_s0 = sld [smem:[#allocation8 + %s959_s24]] }
  0x81   : > { %s397_s18 = scalar_lea.vmem [#allocation2], %s396_s13  ;;  %s437_s22 = sld [smem:[#allocation8 + %s966_s27]] }
  0x82   : > { %605 = vmatpush3.bf16.msra.mxu0 %v604_v32  ;;  %s402_s21 = scalar_lea.vmem [#allocation3], %s401_s17  ;;  %s444_s29 = sld [smem:[#allocation7 + %s966_s27]] }
  0x83   : > { %606 = vmatprep.subr.bf16.mxu0 %v759_v5  ;;  %s409_s23 = scalar_lea.vmem [#allocation2], %s408_s14 }
  0x85   : > { %s421_s28 = scalar_lea.vmem [#allocation2], %s420_s20 }
  0x86   : > { %608 = vmatpush3.bf16.msra.mxu0 %v607_v35  ;;  %s426_s9 = scalar_lea.vmem [#allocation3], %s425_s0 }
  0x89   : > { %583 = vmatmul.mubr.f32.vlgmr.msra.gmra.mrb[0].mxu0 %v256_v36 }
 0x15c   : > { %v346_v38 = vpop.f32.mrb[0].mxu0 }
 0x15d   : > { %v347_v40 = vadd.f32 %v528_v37, %v346_v38  ;;  %v584_v41 = vpop.f32.mrb[1].mxu0 }
 0x15f   : > { %v986_v44 = vadd.f32 %v352_v39, %v347_v40 }
 0x161   : > { %v357_v45 = vadd.f32 %v356_v42, %v986_v44  ;;  %v362_v46 = vmax.f32 %v361_v43, %v986_v44  ;;  %v368_v47 = vrot.slane %v986_v44, 1  ;;  %v380_v52 = vrot.slane %v986_v44, 2 }
 0x162   : > { %v392_v57 = vrot.slane %v986_v44, 3  ;;  %v404_v62 = vrot.slane %v986_v44, 4  ;;  %v416_v3 = vrot.slane %v986_v44, 5  ;;  %v428_v8 = vrot.slane %v986_v44, 6 }
 0x163   : > { %358 = vst [vmem:[%s355_s25] sm:$0x1] %v357_v45  ;;  %363 = vst [vmem:[%s360_s26] sm:$0x1] %v362_v46  ;;  %s432_s25 = sld [smem:[#allocation7 + %s959_s24]]  ;;  %s414_s26 = scalar_lea.vmem [#allocation3], %s413_s19  ;;  %v440_v13 = vrot.slane %v986_v44, 7 }
 0x164   : > { %s438_s24 = scalar_lea.vmem [#allocation3], %s437_s22 }
 0x169   : > { %s433_s2 = scalar_lea.vmem [#allocation2], %s432_s25 }
 0x16a   : > { %v366_v48 = vld [vmem:[%s365_s8] sm:$0x1] }
 0x16b   : > { %v374_v49 = vld [vmem:[%s373_s10] sm:$0x1]  ;;  %v370_v50 = vadd.f32 %v368_v47, %v366_v48 }
 0x16c   : > { %v375_v51 = vmax.f32 %v374_v49, %v368_v47 }
 0x16d   : > { %371 = vst [vmem:[%s365_s8] sm:$0x1] %v370_v50  ;;  %s445_s8 = scalar_lea.vmem [#allocation2], %s444_s29 }
 0x16e   : > { %376 = vst [vmem:[%s373_s10] sm:$0x1] %v375_v51 }
 0x174   : > { %v379_v53 = vld [vmem:[%s378_s12] sm:$0x1] }
 0x175   : > { %v386_v54 = vld [vmem:[%s385_s11] sm:$0x1]  ;;  %v382_v55 = vadd.f32 %v380_v52, %v379_v53 }
 0x176   : > { %v387_v56 = vmax.f32 %v386_v54, %v380_v52 }
 0x177   : > { %383 = vst [vmem:[%s378_s12] sm:$0x1] %v382_v55 }
 0x178   : > { %388 = vst [vmem:[%s385_s11] sm:$0x1] %v387_v56 }
 0x17e   : > { %v391_v58 = vld [vmem:[%s390_s16] sm:$0x1] }
 0x17f   : > { %v398_v59 = vld [vmem:[%s397_s18] sm:$0x1]  ;;  %v394_v60 = vadd.f32 %v392_v57, %v391_v58 }
 0x180   : > { %v399_v61 = vmax.f32 %v398_v59, %v392_v57 }
 0x181   : > { %395 = vst [vmem:[%s390_s16] sm:$0x1] %v394_v60 }
 0x182   : > { %400 = vst [vmem:[%s397_s18] sm:$0x1] %v399_v61 }
 0x188   : > { %v403_v63 = vld [vmem:[%s402_s21] sm:$0x1] }
 0x189   : > { %v410_v0 = vld [vmem:[%s409_s23] sm:$0x1]  ;;  %v406_v1 = vadd.f32 %v404_v62, %v403_v63 }
 0x18a   : > { %v411_v2 = vmax.f32 %v410_v0, %v404_v62 }
 0x18b   : > { %407 = vst [vmem:[%s402_s21] sm:$0x1] %v406_v1 }
 0x18c   : > { %412 = vst [vmem:[%s409_s23] sm:$0x1] %v411_v2 }
 0x192   : > { %v415_v4 = vld [vmem:[%s414_s26] sm:$0x1] }
 0x193   : > { %v422_v5 = vld [vmem:[%s421_s28] sm:$0x1]  ;;  %v418_v6 = vadd.f32 %v416_v3, %v415_v4 }
 0x194   : > { %v423_v7 = vmax.f32 %v422_v5, %v416_v3 }
 0x195   : > { %419 = vst [vmem:[%s414_s26] sm:$0x1] %v418_v6 }
 0x196   : > { %424 = vst [vmem:[%s421_s28] sm:$0x1] %v423_v7 }
 0x19c   : > { %v427_v9 = vld [vmem:[%s426_s9] sm:$0x1] }
 0x19d   : > { %v434_v10 = vld [vmem:[%s433_s2] sm:$0x1]  ;;  %v430_v11 = vadd.f32 %v428_v8, %v427_v9 }
 0x19e   : > { %v435_v12 = vmax.f32 %v434_v10, %v428_v8 }
 0x19f   : > { %431 = vst [vmem:[%s426_s9] sm:$0x1] %v430_v11 }
 0x1a0   : > { %436 = vst [vmem:[%s433_s2] sm:$0x1] %v435_v12 }
 0x1a4   : > { %452 = sbr.rel (%p530_p1) target bundleno = 435 (0x1b3), region = 52 }
 0x1a6   : > { %v439_v14 = vld [vmem:[%s438_s24] sm:$0x1] }
 0x1a7   : > { %v446_v15 = vld [vmem:[%s445_s8] sm:$0x1]  ;;  %v442_v16 = vadd.f32 %v440_v13, %v439_v14 }
 0x1a8   : > { %v447_v17 = vmax.f32 %v446_v15, %v440_v13 }
 0x1a9   : > { %443 = vst [vmem:[%s438_s24] sm:$0x1] %v442_v16 }
 0x1aa   : > { %448 = vst [vmem:[%s445_s8] sm:$0x1] %v447_v17 }
 0x1b1   : > { %v453_v18 = vld [vmem:[#allocation2] sm:$0xff] }
 0x1b2   : > { %454 = vst [vmem:[%s1021_s7] sm:$0xff] %v453_v18 }
 0x1b3 PF: > { %s27_s1 = sadd.s32 1, %s749_s1  }
 0x1b4   : > { %p24_p5 = scmp.ge.s32.totalorder %s27_s1, 7  }
 0x1b6   :  { %26 = sbr.rel (!%p24_p5) target bundleno = 28 (0x1c), region = 101 }
 0x1bd   :  { %466 = vsyncpa [#allocation10], 1 }
 0x1be   :  { %468 = vsyncpa [#allocation10 + $0x1], 1 }
 0x1bf   :  { %469 = vsyncpa [#allocation12], 1 }

</bundles_post_ra>
